<compile_context>
chip_gen: v5e
topology: v5e:2x2
jax: 0.10.0
libtpu: 0.0.40
codegen_flags: <defaults>
</compile_context>

<pallas_src>
import jax
import jax.numpy as jnp
from jax.experimental import pallas as pl
from jax.experimental.pallas import tpu as pltpu

_LANE = 128


def _round_up(x, m):
    return (x + m - 1) // m * m


def _cdiv(a, b):
    return (a + b - 1) // b


def _per_block_budget_bytes():
    """Per-block input byte budget, sized per generation (HBM speed / VMEM)."""
    try:
        kind = jax.devices()[0].device_kind.lower()
    except Exception:
        kind = ""
    if "v7" in kind or "7x" in kind:
        return 6 * 1024 * 1024   # ~3.2 TB/s: large blocks hide the ~0.35us/step overhead
    if "v6" in kind:
        return 4 * 1024 * 1024   # ~1.4 TB/s
    return 2 * 1024 * 1024       # v5e / unknown: conservative (16 MiB scoped default)


def _choose_tiling(B, C, HW, itemsize, budget):
    """Pick (bt, t, grid) for the (B, C, HW) view."""
    sublane = 32 // itemsize                  # f32 -> 8, bf16 -> 16, int8 -> 32
    c_pad = _round_up(C, sublane)             # real sublane footprint of the C axis
    hw128 = _round_up(HW, _LANE)

    if HW < _LANE:
        # Tiny spatial axis: one full-extent block (masked stores, tiny tensor).
        t, num_t = HW, 1
    else:
        # Largest 128-aligned lane tile whose (1, c_pad, t) block fits the
        # budget (no artificial cap), then split the 128-rounded extent evenly.
        # The ragged tail stays inside the kernel, so OOB lanes never hit HBM.
        max_t = max(_LANE, (budget // (c_pad * itemsize)) // _LANE * _LANE)
        num_t = _cdiv(hw128, max_t)
        t = _round_up(_cdiv(hw128, num_t), _LANE)
        num_t = _cdiv(HW, t)

    # Fuse batch rows while one block stays within the (sublane-padded) budget.
    bt = max(1, min(B, budget // max(1, c_pad * t * itemsize)))
    while B % bt:
        bt -= 1

    # Keep >= 2 grid blocks when possible so v7x's two TensorCores share work.
    if (B // bt) * num_t < 2:
        if B >= 2:
            bt = B // 2
            while B % bt:
                bt -= 1
        elif HW >= 2 * _LANE:
            t = _round_up(_cdiv(hw128, 2), _LANE)
            num_t = _cdiv(HW, t)

    return bt, t, (B // bt, num_t)


def _triangle_kernel(x_ref, o_ref):
    # x_ref: (bt, C, t) block in VMEM. Channel (axis=1) is the reduction axis;
    # t lanes are 128-aligned (or the full tiny extent). Out-of-bounds lanes of
    # a ragged boundary block only affect their own (discarded) output lanes.
    x = x_ref[...].astype(jnp.float32)
    mean_c = jnp.mean(x, axis=1, keepdims=True)
    o_ref[...] = jnp.maximum(x - mean_c, 0.0).astype(o_ref.dtype)


@jax.jit
def triangle_forward(x):
    """x: (B, C, H, W) -> relu(x - mean over the channel axis)."""
    B, C, H, W = x.shape
    HW = H * W
    itemsize = jnp.dtype(x.dtype).itemsize
    budget = _per_block_budget_bytes()
    bt, t, grid = _choose_tiling(B, C, HW, itemsize, budget)

    block = (bt, C, t)
    block_bytes = bt * _round_up(C, 32 // itemsize) * t * itemsize
    # Double-buffered input + output blocks, plus slack; capped for v7x VMEM.
    vmem_limit = int(min(48 << 20, 4 * block_bytes + (4 << 20)))

    x3 = x.reshape(B, C, HW)
    out3 = pl.pallas_call(
        _triangle_kernel,
        out_shape=jax.ShapeDtypeStruct((B, C, HW), x.dtype),
        grid=grid,
        in_specs=[pl.BlockSpec(block, lambda b, s: (b, 0, s))],
        out_specs=pl.BlockSpec(block, lambda b, s: (b, 0, s)),
        cost_estimate=pl.CostEstimate(
            flops=3 * B * C * HW,
            transcendentals=0,
            bytes_accessed=2 * B * C * HW * itemsize,
        ),
        compiler_params=pltpu.CompilerParams(
            dimension_semantics=("parallel", "parallel"),
            vmem_limit_bytes=vmem_limit,
        ),
    )(x3)
    return out3.reshape(B, C, H, W)


def _reference(x):
    return jnp.maximum(x - jnp.mean(x, axis=1, keepdims=True), 0.0)


if __name__ == "__main__":
    key = jax.random.PRNGKey(0)
    k0, k1, k2 = jax.random.split(key, 3)

    # Primary shape from the module's usage.
    x = jax.random.normal(k0, (2, 4, 16, 16), dtype=jnp.float32)
    y = triangle_forward(x)
    jax.block_until_ready(y)
    assert jnp.allclose(y, _reference(x), atol=1e-5, rtol=1e-5), "mismatch vs reference"

    # Sub-128 spatial extent (full-extent lane block, masked stores).
    x2 = jax.random.normal(k1, (2, 8, 7, 7), dtype=jnp.float32)
    y2 = triangle_forward(x2)
    jax.block_until_ready(y2)
    assert jnp.allclose(y2, _reference(x2), atol=1e-5, rtol=1e-5), "mismatch (7x7)"

    # Non-128-multiple H*W >= 128 exercises the in-kernel ragged tail path.
    x3 = jax.random.normal(k2, (2, 8, 12, 12), dtype=jnp.float32)
    y3 = triangle_forward(x3)
    jax.block_until_ready(y3)
    assert jnp.allclose(y3, _reference(x3), atol=1e-5, rtol=1e-5), "mismatch (12x12)"

    print("KERNEL_OK")
</pallas_src>

<mosaic_0001>
module attributes {stable_mosaic.version = 11 : i64} {
  func.func @_triangle_kernel(%arg0: i32, %arg1: i32, %arg2: memref<1x4x256xf32, #tpu.memory_space<vmem>>, %arg3: memref<1x4x256xf32, #tpu.memory_space<vmem>>) attributes {dimension_semantics = [#tpu.dimension_semantics<parallel>, #tpu.dimension_semantics<parallel>], iteration_bounds = array<i64: 2, 1>, scalar_prefetch = 0 : i64, scratch_operands = 0 : i64, tpu.core_type = #tpu.core_type<tc>, window_params = [{transform_indices = @transform_0, window_bounds = array<i64: 1, 4, 256>}, {transform_indices = @transform_1, window_bounds = array<i64: 1, 4, 256>}]} {
    %c0 = arith.constant 0 : index
    %c0_0 = arith.constant 0 : index
    %c0_1 = arith.constant 0 : index
    %0 = vector.load %arg2[%c0, %c0_0, %c0_1] : memref<1x4x256xf32, #tpu.memory_space<vmem>>, vector<1x4x256xf32>
    %cst = arith.constant dense<0.000000e+00> : vector<1x256xf32>
    %1 = vector.multi_reduction <add>, %0, %cst [1] : vector<1x4x256xf32> to vector<1x256xf32>
    %2 = vector.shape_cast %1 : vector<1x256xf32> to vector<1x1x256xf32>
    %cst_2 = arith.constant 4.000000e+00 : f32
    %3 = vector.broadcast %cst_2 : f32 to vector<1x1x256xf32>
    %4 = arith.divf %2, %3 : vector<1x1x256xf32>
    %5 = vector.broadcast %4 : vector<1x1x256xf32> to vector<1x4x256xf32>
    %6 = arith.subf %0, %5 : vector<1x4x256xf32>
    %cst_3 = arith.constant 0.000000e+00 : f32
    %7 = vector.broadcast %cst_3 : f32 to vector<1x4x256xf32>
    %8 = arith.maximumf %6, %7 : vector<1x4x256xf32>
    %c0_4 = arith.constant 0 : index
    %c0_5 = arith.constant 0 : index
    %c0_6 = arith.constant 0 : index
    %9 = vector.load %arg3[%c0_4, %c0_5, %c0_6] : memref<1x4x256xf32, #tpu.memory_space<vmem>>, vector<1x4x256xf32>
    tpu.vector_store %arg3[%c0_4, %c0_5, %c0_6], %8 {strides = array<i32>} : memref<1x4x256xf32, #tpu.memory_space<vmem>>, vector<1x4x256xf32>,
    return
  }
  func.func @transform_0(%arg0: i32, %arg1: i32) -> (i32, i32, i32) {
    %c0_i32 = arith.constant 0 : i32
    %c0_i32_0 = arith.constant 0 : i32
    return %arg0, %c0_i32, %arg1 : i32, i32, i32
  }
  func.func @transform_1(%arg0: i32, %arg1: i32) -> (i32, i32, i32) {
    %c0_i32 = arith.constant 0 : i32
    %c0_i32_0 = arith.constant 0 : i32
    return %arg0, %c0_i32, %arg1 : i32, i32, i32
  }
}

</mosaic_0001>

<bundles_post_ra>
// kernel: triangle_forward.1
= control target key start
LH: loop header
LB: loop body
LE: loop exit
PB: predicated region body
PF: predicated region fallthrough
CT: control target
= control target key end

     0   :  { %s357_s6 = smov 0   ;;  %s359_s7 = smov 0   ;;  %s400_s0 = inlined_call_operand.vmem [shape: f32[2,4,256], index: 0, kind: input, shape index: {}]   ;;  %s401_s1 = inlined_call_operand.vmem [shape: f32[2,4,256], index: 1, kind: output, shape index: {}]  }
   0x1   :  { %s361_s8 = smov 0  }
   0x2 LB: > { %s23_s9 = sadd.s32 1, %s340_s7  ;;  %p286_p0 = scmp.ge.s32.totalorder %s344_s8, 1  ;;  %s344_s8 = sphi %s361_s8, %s11_s8   ;;  %s340_s7 = sphi %s359_s7, %s403_s7   ;;  %s336_s6 = sphi %s357_s6, %s402_s6  }
   0x3   : > { %p25_p1 = scmp.ge.s32.totalorder %s23_s9, 2  ;;  %p108_p2 = scmp.lt.s32.totalorder %s344_s8, 3 }
   0x5   : > { %s405_s9 = smov (%p25_p1, %s23_s9), 0  ;;  %p109_p3 = pnand %p286_p0, %p108_p2 }
   0x6   : > { %p137_p4 = scmp.lt.s32.totalorder (!%p109_p3), %s336_s6, 1 }
   0x7   : > { %112 = sbr.rel (%p109_p3) target bundleno = 47 (0x2f), region = 24 }
   0xc   : > { %v346_v0 = vmov 4.0   ;;  %s407_s6 = smov (!%p137_p4, %s336_s6), 1  ;;  %vm163_vm0 = vcmask 1043456  }
   0xd   : > { %320 = vrcp.f32 %v346_v0  ;;  %s293_s10 = sshll.u32 %s407_s6, 3 }
   0xe   : > { %s144_s13 = scalar_lea.vmem %s400_s0, %s293_s10  ;;  %s154_s16 = scalar_lea.vmem %s401_s1, %s293_s10 }
   0xf   : > { %v156_v1 = vld [vmem:[%s144_s13] sm:$0xff] }
  0x10   : > { %158 = vst [vmem:[#allocation1] ss:$2 sm:$0xff] %v156_v1 }
  0x13   : > { %v321_v2 = vpop.eup %320 }
  0x14   : > { %v179_v3 = vmul.f32 4.0, %v321_v2  ;;  %vm183_vm1 = vweird.f32 %v321_v2 }
  0x16   : > { %v180_v4 = vsub.f32 1.0, %v179_v3 }
  0x17   : > { %v159_v5 = vld.sshfl [vmem:[#allocation1] sm:$0xff pattern:$0x75316420]  ;;  %v160_v6 = vld.sshfl [vmem:[#allocation1 + $0x8] sm:$0xff pattern:$0x75316420] }
  0x18   : > { %v164_v7 = vsel %vm163_vm0, %v159_v5, 0.0  ;;  %v171_v8 = vsel %vm163_vm0, %v160_v6, 0.0  ;;  %v181_v11 = vmul.f32 %v321_v2, %v180_v4 }
  0x19   : > { %v165_v9 = vrot.slane %v164_v7, 4  ;;  %v172_v10 = vrot.slane %v171_v8, 4 }
  0x1a   : > { %v182_v16 = vadd.f32 %v321_v2, %v181_v11 }
  0x1b   : > { %v166_v12 = vadd.f32 %v165_v9, %v164_v7  ;;  %v173_v13 = vadd.f32 %v172_v10, %v171_v8 }
  0x1c   : > { %v184_v21 = vsel %vm183_vm1, %v321_v2, %v182_v16 }
  0x1d   : > { %v167_v14 = vrot.slane %v166_v12, 2  ;;  %v174_v15 = vrot.slane %v173_v13, 2 }
  0x1f   : > { %v168_v17 = vadd.f32 %v167_v14, %v166_v12  ;;  %v175_v18 = vadd.f32 %v174_v15, %v173_v13 }
  0x21   : > { %v169_v19 = vrot.slane %v168_v17, 1  ;;  %v176_v20 = vrot.slane %v175_v18, 1 }
  0x23   : > { %v170_v22 = vadd.f32 %v169_v19, %v168_v17  ;;  %v177_v23 = vadd.f32 %v176_v20, %v175_v18 }
  0x25   : > { %v186_v24 = vmul.f32 %v184_v21, %v177_v23  ;;  %v185_v25 = vmul.f32 %v184_v21, %v170_v22 }
  0x27   : > { %v189_v26 = vrot.slane %v186_v24, 4 }
  0x29   : > { %v190_v27 = vsel %vm163_vm0, %v185_v25, %v189_v26 }
  0x2a   : > { %v192_v28 = vsub.f32 %v156_v1, %v190_v27 }
  0x2c   : > { %v193_v29 = vmax.f32 %v192_v28, 0.0 }
  0x2e   : > { %194 = vst [vmem:[%s154_s16] sm:$0xff] %v193_v29 }
  0x2f PF: > { %s11_s8 = sadd.s32 1, %s344_s8   ;;  %s402_s6 = smov %s340_s7 }
  0x30   : > { %p8_p5 = scmp.ge.s32.totalorder %s11_s8, 4   ;;  %s403_s7 = smov %s405_s9 }
  0x32   :  { %10 = sbr.rel (!%p8_p5) target bundleno = 2 (0x2), region = 54 }

</bundles_post_ra>
